<compile_context>
chip_gen: v5e
topology: v5e:2x2
jax: 0.10.0
libtpu: 0.0.40
codegen_flags: <defaults>
</compile_context>

<pallas_src>
import functools
import math

import jax
import jax.numpy as jnp
from jax.experimental import pallas as pl
from jax.experimental.pallas import tpu as pltpu


def _scalenorm_kernel(g_ref, x_ref, o_ref, *, sqrt_dim, inv_eps):
    # g_ref: scalar-prefetch SMEM ref, shape (1,) f32
    # x_ref / o_ref: VMEM tiles (block_rows, dim)
    x_f32 = x_ref[...].astype(jnp.float32)

    # Row-wise sum of squares, accumulated in f32.
    sq = jnp.sum(x_f32 * x_f32, axis=-1, keepdims=True)               # (tm, 1)

    # 1 / clamp(||x|| * dim**-0.5, eps)  ==  min(rsqrt(sq) * sqrt(dim), 1/eps)
    # (the min also handles all-zero rows: rsqrt(0) = inf -> clamped to 1/eps)
    inv = jnp.minimum(jax.lax.rsqrt(sq) * sqrt_dim, inv_eps)          # (tm, 1) f32

    scale = inv * g_ref[0]                                            # fold g into one multiply

    # Multiply in f32, round once at the store: better accuracy for bf16 outputs,
    # perf-neutral in a memory-bound kernel (and v5e has no bf16 VALU anyway).
    o_ref[...] = (x_f32 * scale).astype(o_ref.dtype)


def _vmem_policy():
    """Return (vmem_limit_bytes, pipeline_buffer_budget_bytes), generation-aware."""
    try:
        phys = pltpu.get_tpu_info().vmem_capacity_bytes
    except Exception:
        phys = 64 * 1024 * 1024              # conservative: v7x per-TC VMEM
    if phys >= 128 * 1024 * 1024:            # v5e / v6e (128 MiB physical)
        return 64 * 1024 * 1024, 28 * 1024 * 1024
    # v7x: 64 MiB physical per TC -> keep the scoped limit <= ~48 MiB
    return 48 * 1024 * 1024, 20 * 1024 * 1024


def scale_norm(x, g, *, eps=1e-4, block_rows=None):
    """ScaleNorm over the last axis of x. g is a scalar parameter (shape (1,) or ())."""
    orig_shape = x.shape
    dim = int(orig_shape[-1])
    rows = int(math.prod(orig_shape[:-1])) if len(orig_shape) > 1 else 1
    x2 = x.reshape(rows, dim)

    itemsize = x2.dtype.itemsize
    sublane = max(8, 32 // itemsize)         # f32: 8, bf16: 16, int8/fp8: 32
    vmem_limit, buf_budget = _vmem_policy()

    # --- tile sizing: biggest row tile that keeps the double-buffered (in + out)
    #     pipeline buffers plus one f32 working copy under the VMEM budget. ------
    if block_rows is None:
        bytes_per_row = 4 * dim * itemsize + 4 * dim   # 2x(in+out) buffers + f32 temp
        block_rows = max(sublane, buf_budget // bytes_per_row)

    rows_padded = ((rows + sublane - 1) // sublane) * sublane
    block_rows = min(int(block_rows), rows_padded)
    block_rows = max(sublane, block_rows - (block_rows % sublane))

    # v7x has 2 TensorCores: make sure the "parallel" grid axis has >= 2 steps
    # whenever the input is large enough to split (harmless on v5e/v6e: 1 TC).
    if pl.cdiv(rows, block_rows) < 2 and rows > sublane:
        half = ((block_rows // 2 + sublane - 1) // sublane) * sublane
        block_rows = max(sublane, half)

    grid = (pl.cdiv(rows, block_rows),)

    g_prefetch = jnp.asarray(g, jnp.float32).reshape(1)

    kernel = functools.partial(
        _scalenorm_kernel,
        sqrt_dim=float(dim) ** 0.5,
        inv_eps=1.0 / float(eps),
    )

    cost = pl.CostEstimate(
        flops=3 * rows * dim,                          # square, reduce, scale
        transcendentals=rows,                          # one rsqrt per row
        bytes_accessed=2 * rows * dim * itemsize,      # stream in + stream out
    )

    out = pl.pallas_call(
        kernel,
        out_shape=jax.ShapeDtypeStruct((rows, dim), x.dtype),
        grid_spec=pltpu.PrefetchScalarGridSpec(
            num_scalar_prefetch=1,                                      # g -> SMEM
            grid=grid,
            in_specs=[pl.BlockSpec((block_rows, dim), lambda i, g: (i, 0))],
            out_specs=pl.BlockSpec((block_rows, dim), lambda i, g: (i, 0)),
        ),
        compiler_params=pltpu.CompilerParams(
            dimension_semantics=("parallel",),
            vmem_limit_bytes=vmem_limit,
        ),
        cost_estimate=cost,
    )(g_prefetch, x2)

    return out.reshape(orig_shape)


def scale_norm_ref(x, g, eps=1e-4):
    dim = x.shape[-1]
    xf = x.astype(jnp.float32)
    norm = jnp.linalg.norm(xf, axis=-1, keepdims=True) * dim ** -0.5
    return (xf / jnp.maximum(norm, eps) * jnp.asarray(g, jnp.float32).reshape(())).astype(x.dtype)


if __name__ == "__main__":
    key = jax.random.PRNGKey(0)
    k0, k1, k2 = jax.random.split(key, 3)

    # Deterministic parameter init, matching nn.Parameter(torch.ones(1))
    g = jnp.ones((1,), dtype=jnp.float32)

    # 1) Small shape implied by the module (dim = hidden)
    B, S, D = 2, 8, 32
    x = jax.random.normal(k0, (B, S, D), dtype=jnp.float32)
    out = jax.block_until_ready(scale_norm(x, g, eps=1e-4))
    ref = scale_norm_ref(x, g, eps=1e-4)
    assert out.shape == x.shape and out.dtype == x.dtype
    assert jnp.allclose(out, ref, atol=2e-5, rtol=2e-5), "fp32 mismatch vs reference"

    # 2) Non-divisible row count + multi-block grid (exercises the masked
    #    partial last block).
    x2 = jax.random.normal(k1, (100, 256), dtype=jnp.float32)
    out2 = jax.block_until_ready(scale_norm(x2, g, eps=1e-4, block_rows=64))
    ref2 = scale_norm_ref(x2, g, eps=1e-4)
    assert jnp.allclose(out2, ref2, atol=2e-5, rtol=2e-5), "partial-block mismatch"

    # 3) bf16 path: f32 accumulation, f32 scaling multiply, single round at store.
    x3 = jax.random.normal(k2, (4, 16, 256), dtype=jnp.bfloat16)
    out3 = jax.block_until_ready(scale_norm(x3, g, eps=1e-4))
    ref3 = scale_norm_ref(x3, g, eps=1e-4)
    assert out3.dtype == jnp.bfloat16
    assert jnp.allclose(out3.astype(jnp.float32), ref3.astype(jnp.float32),
                        atol=3e-2, rtol=3e-2), "bf16 mismatch vs reference"

    print("KERNEL_OK")
</pallas_src>

<mosaic_0001>
module attributes {stable_mosaic.version = 11 : i64} {
  func.func @_scalenorm_kernel(%arg0: i32, %arg1: memref<1xf32, #tpu.memory_space<smem>>, %arg2: memref<8x32xf32, #tpu.memory_space<vmem>>, %arg3: memref<8x32xf32, #tpu.memory_space<vmem>>) attributes {dimension_semantics = [#tpu.dimension_semantics<parallel>], iteration_bounds = array<i64: 2>, scalar_prefetch = 1 : i64, scratch_operands = 0 : i64, tpu.core_type = #tpu.core_type<tc>, window_params = [{transform_indices = @transform_0, window_bounds = array<i64: 8, 32>}, {transform_indices = @transform_1, window_bounds = array<i64: 8, 32>}]} {
    %c0 = arith.constant 0 : index
    %c0_0 = arith.constant 0 : index
    %0 = vector.load %arg2[%c0, %c0_0] : memref<8x32xf32, #tpu.memory_space<vmem>>, vector<8x32xf32>
    %1 = arith.mulf %0, %0 : vector<8x32xf32>
    %cst = arith.constant dense<0.000000e+00> : vector<8xf32>
    %2 = vector.multi_reduction <add>, %1, %cst [1] : vector<8x32xf32> to vector<8xf32>
    %3 = vector.shape_cast %2 : vector<8xf32> to vector<8x1xf32>
    %4 = math.rsqrt %3 : vector<8x1xf32>
    %cst_1 = arith.constant 5.65685415 : f32
    %5 = vector.broadcast %cst_1 : f32 to vector<8x1xf32>
    %6 = arith.mulf %4, %5 : vector<8x1xf32>
    %cst_2 = arith.constant 1.000000e+04 : f32
    %7 = vector.broadcast %cst_2 : f32 to vector<8x1xf32>
    %8 = arith.minimumf %6, %7 : vector<8x1xf32>
    %c0_3 = arith.constant 0 : index
    %9 = memref.load %arg1[%c0_3] : memref<1xf32, #tpu.memory_space<smem>>
    %10 = vector.broadcast %9 : f32 to vector<8x1xf32>
    %11 = arith.mulf %8, %10 : vector<8x1xf32>
    %12 = vector.broadcast %11 : vector<8x1xf32> to vector<8x32xf32>
    %13 = arith.mulf %0, %12 : vector<8x32xf32>
    %c0_4 = arith.constant 0 : index
    %c0_5 = arith.constant 0 : index
    %14 = vector.load %arg3[%c0_4, %c0_5] : memref<8x32xf32, #tpu.memory_space<vmem>>, vector<8x32xf32>
    tpu.vector_store %arg3[%c0_4, %c0_5], %13 {strides = array<i32>} : memref<8x32xf32, #tpu.memory_space<vmem>>, vector<8x32xf32>,
    return
  }
  func.func @transform_0(%arg0: i32, %arg1: memref<1xf32, #tpu.memory_space<smem>>) -> (i32, i32) {
    %c0_i32 = arith.constant 0 : i32
    %c0_i32_0 = arith.constant 0 : i32
    return %arg0, %c0_i32 : i32, i32
  }
  func.func @transform_1(%arg0: i32, %arg1: memref<1xf32, #tpu.memory_space<smem>>) -> (i32, i32) {
    %c0_i32 = arith.constant 0 : i32
    %c0_i32_0 = arith.constant 0 : i32
    return %arg0, %c0_i32 : i32, i32
  }
}

</mosaic_0001>

<bundles_post_ra>
// kernel: tpu_custom_call.1
= control target key start
LH: loop header
LB: loop body
LE: loop exit
PB: predicated region body
PF: predicated region fallthrough
CT: control target
= control target key end

     0   :  { %s550_s0 = inlined_call_operand.<no memory space> [shape: f32[1], index: 0, kind: input, shape index: {}]   ;;  %s551_s1 = inlined_call_operand.hbm [shape: f32[16,32], index: 1, kind: input, shape index: {}]   ;;  %s552_s2 = inlined_call_operand.hbm [shape: f32[16,32], index: 2, kind: output, shape index: {}]  }
   0x1   :  { %7 = sst [smem:[#allocation3]] %s550_s0 }
   0x2   :  { %8 = vsyncpa [#allocation5], 0 }
   0x3   :  { %10 = vsyncpa [#allocation5 + $0x1], 0 }
   0x4   :  { %11 = vsyncpa [#allocation6], 0 }
   0x5   :  { %13 = vsyncpa [#allocation6 + $0x1], 0  ;;  %s421_s11 = smov 0   ;;  %s423_s12 = smov 0  }
   0x6   :  { %s425_s13 = smov 0   ;;  %s427_s14 = smov 0  }
   0x7 LB: > { %s442_s0 = sadd.s32 4294967295, %s401_s14   ;;  %s245_s15 = sadd.s32 4294967294, %s401_s14   ;;  %s401_s14 = sphi %s427_s14, %s562_s14   ;;  %s397_s13 = sphi %s425_s13, %s561_s13   ;;  %s393_s12 = sphi %s423_s12, %s560_s12   ;;  %s389_s11 = sphi %s421_s11, %s559_s11  }
   0x8   : > { %s446_s16 = sadd.s32 1, %s401_s14   ;;  %s26_s17 = sadd.s32 1, %s397_s13 }
   0x9   : > { %s23_s18 = ssub.s32 %s401_s14, %s446_s16  ;;  %p33_p0 = scmp.ne.s32.totalorder %s397_s13, %s393_s12 }
   0xa   : > { %p24_p1 = scmp.eq.s32.totalorder %s23_s18, 0  ;;  %p34_p2 = scmp.eq.s32.totalorder %s401_s14, 0 }
   0xb   : > { %p39_p3 = scmp.ne.s32.totalorder %s393_s12, %s389_s11  ;;  %p40_p4 = scmp.eq.s32.totalorder %s442_s0, 0 }
   0xc   : > { %s458_s19 = scalar_select %p24_p1, %s397_s13, %s26_s17  }
   0xd   : > { %p460_p5 = por %p34_p2, %p33_p0  ;;  %p464_p6 = por %p40_p4, %p39_p3 }
   0xe   : > { %p63_p7 = scmp.eq.s32.totalorder %s442_s0, 1  ;;  %p69_p8 = scmp.eq.s32.totalorder %s245_s15, 1 }
   0xf   : > { %p269_p10 = scmp.lt.s32.totalorder %s401_s14, 2  ;;  %s89_s24 = sand.u32 1, %s397_s13  }
  0x10   : > { %p471_p11 = por %p63_p7, %p33_p0  ;;  %p475_p12 = por %p69_p8, %p39_p3 }
  0x11   : > { %s249_s25 = sshll.u32 %s401_s14, 3  ;;  %s248_s26 = sshll.u32 %s89_s24, 3 }
  0x12   : > { %s97_s29 = scalar_lea.hbm %s551_s1, %s249_s25  ;;  %s93_s3 = scalar_lea.vmem [#allocation4], %s248_s26 }
  0x13   : > { %s99_s30 = sshll.u32 %s97_s29, 4  ;;  %s101_s4 = sshll.u32 %s93_s3, 4  ;;  %s100_s30 = int_to_ptr.hbm [resolvable:$true] %s99_s30  ;;  %s102_s4 = int_to_ptr.vmem [resolvable:$true] %s101_s4 }
  0x14   : > { %p486_p13 = pnand %p269_p10, %p460_p5  ;;  %p250_p0 = scmp.ge.s32.totalorder %s401_s14, 1 }
  0x15   : > { %p106_p1 = scmp.lt.s32.totalorder %s401_s14, 3  ;;  %s90_s6 = scalar_lea.sflag [#allocation5], %s89_s24 }
  0x16   : > { %s305_s7 = sshra.s32 %s100_s30, 4  ;;  %p309_p3 = pneg %p486_p13  ;;  %s306_s7 = int_to_ptr.hbm [resolvable:$true] %s305_s7 }
  0x17   : > { %s307_s8 = scalar_lea.hbm %s306_s7, 8  ;;  %s312_s15 = scalar_lea.hbm %s551_s1, 16 }
  0x18   : > { %p308_p2 = scmp.ne.s32.totalorder %s306_s7, %s307_s8  ;;  %p313_p5 = scmp.lt.s32.totalorder %s306_s7, %s551_s1 }
  0x19   : > { %p314_p8 = scmp.lt.s32.totalorder %s312_s15, %s307_s8 }
  0x1a   : > { %p310_p4 = pnand %p309_p3, %p308_p2 }
  0x1b   : > { %p315_p10 = por %p314_p8, %p313_p5 }
  0x1c   : > { %p311_p7 = pneg %p310_p4 }
  0x1e   : > { %p316_p9 = pnand %p315_p10, %p311_p7 }
  0x20   : > { %319 = shalt.err (!%p316_p9)
}
  0x21   : > { %264 = dma.hbm_to_vmem [thread:$0]  (!%p486_p13), %s100_s30, 128, %s102_s4, %s90_s6  }
  0x22   : > { %p107_p2 = pnand %p250_p0, %p106_p1 }
  0x23   : > { %s507_s20 = sand.u32 (!%p107_p2), 1, %s393_s12  }
  0x24   : > { %110 = sbr.rel (%p107_p2) target bundleno = 191 (0xbf), region = 24  ;;  %s251_s24 = sshll.u32 (!%p107_p2), %s507_s20, 3 }
  0x25   : > { %s113_s25 = scalar_lea.sflag (!%p107_p2), [#allocation5], %s507_s20  ;;  %s116_s26 = scalar_lea.vmem (!%p107_p2), [#allocation4], %s251_s24 }
  0x29   : > { %380 = dma.done.wait (%p464_p6), %s113_s25, 128  }
  0x2a   : > { %382 = vsyncadd (%p464_p6), %s113_s25, 4294967168  ;;  %v136_v0 = vld [vmem:[%s116_s26] sm:$0xff]  ;;  %vm138_vm0 = vcmask 261120   ;;  %s154_s27 = sld [smem:[#allocation3]]  ;;  %s254_s21 = sshll.u32 %s442_s0, 3 }
  0x2b   : > { %v137_v1 = vmul.f32 %v136_v0, %v136_v0  ;;  %s170_s30 = scalar_lea.hbm %s552_s2, %s254_s21  ;;  %s135_s3 = scalar_lea.vmem [#allocation7], %s251_s24 }
  0x2c   : > { %s172_s4 = sshll.u32 %s135_s3, 4  ;;  %s174_s5 = sshll.u32 %s170_s30, 4  ;;  %s173_s4 = int_to_ptr.vmem [resolvable:$true] %s172_s4  ;;  %s175_s5 = int_to_ptr.hbm [resolvable:$true] %s174_s5 }
  0x2d   : > { %v139_v2 = vsel %vm138_vm0, %v137_v1, 0.0  ;;  %s160_s0 = scalar_lea.sflag [#allocation6], %s507_s20  ;;  %s349_s6 = sshra.s32 %s175_s5, 4  ;;  %s350_s6 = int_to_ptr.hbm [resolvable:$true] %s349_s6 }
  0x2e   : > { %140 = vadd.xlane.f32.xlu0 %v139_v2  ;;  %s351_s7 = scalar_lea.hbm %s350_s6, 8  ;;  %s355_s10 = scalar_lea.hbm %s552_s2, 16 }
  0x2f   : > { %p352_p6 = scmp.ne.s32.totalorder %s350_s6, %s351_s7  ;;  %p356_p0 = scmp.lt.s32.totalorder %s350_s6, %s552_s2 }
  0x30   : > { %v155_v12 = vstv %s154_s27  ;;  %p357_p1 = scmp.lt.s32.totalorder %s355_s10, %s351_s7 }
  0x31   : > { %p353_p9 = pnand %p352_p6, %p471_p11 }
  0x32   : > { %p358_p3 = por %p357_p1, %p356_p0 }
  0x33   : > { %p354_p13 = pneg %p353_p9 }
  0x35   : > { %p359_p4 = pnand %p358_p3, %p354_p13 }
  0xa1   : > { %v141_v3 = vpop.xlane.xlu0 %140 }
  0xa2   : > { %303 = vrsqrt.f32 %v141_v3  ;;  %vm148_vm2 = vweird.f32 %v141_v3 }
  0xa8   : > { %v304_v4 = vpop.eup %303 }
  0xa9   : > { %v143_v5 = vmul.f32 %v304_v4, %v141_v3  ;;  %vm149_vm1 = vweird.f32 %v304_v4 }
  0xaa   : > { %vm150_vm3 = vmor %vm148_vm2, %vm149_vm1 }
  0xab   : > { %v144_v6 = vmul.f32 %v304_v4, %v143_v5 }
  0xad   : > { %v145_v7 = vmul.f32 0.5, %v144_v6 }
  0xaf   : > { %v146_v8 = vsub.f32 1.5, %v145_v7 }
  0xb1   : > { %v147_v9 = vmul.f32 %v304_v4, %v146_v8 }
  0xb3   : > { %v151_v10 = vsel %vm150_vm3, %v304_v4, %v147_v9 }
  0xb4   : > { %v152_v11 = vmul.f32 5.656854, %v151_v10 }
  0xb6   : > { %v153_v13 = vmin.f32 %v152_v11, 10000.0 }
  0xb8   : > { %v156_v14 = vmul.f32 %v155_v12, %v153_v13 }
  0xba   : > { %v157_v15 = vmul.f32 %v156_v14, %v136_v0 }
  0xbc   : > { %158 = vst.msk [vmem:[%s135_s3] sm:$0xff] %vm138_vm0, %v157_v15 }
  0xbd   : > { %362 = shalt.err (!%p359_p4)
}
  0xbe   : > { %259 = dma.vmem_to_hbm [thread:$0]  (%p471_p11), %s173_s4, 128, %s175_s5, %s160_s0  }
  0xbf PF: > { %s186_s18 = sand.u32 1, %s389_s11   ;;  %p558_p7 = scmp.ge.s32.totalorder %s401_s14, 2 }
  0xc0   : > { %s187_s20 = scalar_lea.sflag [#allocation6], %s186_s18 }
  0xc1   : > { %p266_p5 = pnand %p558_p7, %p475_p12 }
  0xc3   : > { %p267_p8 = pneg %p266_p5 }
  0xc5   : > { %384 = dma.done.wait (%p267_p8), %s187_s20, 128  }
  0xc6   : > { %386 = vsyncadd (%p267_p8), %s187_s20, 4294967168  ;;  %p16_p10 = scmp.ge.s32.totalorder %s446_s16, 4   ;;  %s559_s11 = smov %s393_s12 }
  0xc7   : > { %s560_s12 = smov %s397_s13  ;;  %s561_s13 = smov %s458_s19 }
  0xc8   : > { %s562_s14 = smov %s446_s16  ;;  %18 = sbr.rel (!%p16_p10) target bundleno = 7 (0x7), region = 69 }
  0xcd   :  { %193 = vsyncpa [#allocation5], 1 }
  0xce   :  { %195 = vsyncpa [#allocation5 + $0x1], 1 }
  0xcf   :  { %196 = vsyncpa [#allocation6], 1 }
  0xd0   :  { %198 = vsyncpa [#allocation6 + $0x1], 1 }

</bundles_post_ra>
